<compile_context>
chip_gen: v7x
topology: tpu7x:2x2x1
jax: 0.10.0
libtpu: 0.0.40
codegen_flags: <defaults>
</compile_context>

<pallas_src>
import functools

import jax
import jax.numpy as jnp
from jax.experimental import pallas as pl
from jax.experimental.pallas import tpu as pltpu

ALPHA = 0.5
EPS = 1e-5
LANE = 128


def _hybrid_loss_kernel(pred_ref, tgt_ref, out_ref, *, a_scaled, b_scaled, eps):
    # Cast per-tile inside the kernel (no-op for f32; keeps HBM traffic at the
    # input dtype if bf16 is ever fed; f32 math is the only fast path on v5e).
    p = pred_ref[...].astype(jnp.float32)
    t = tgt_ref[...].astype(jnp.float32)

    diff = p - t
    diff2 = diff * diff                      # (pred - target)^2
    denom = jnp.maximum(t * t, eps)          # target^2.clamp_min(eps)

    # EUP approximate reciprocal + one Newton-Raphson refinement.
    # Do NOT drop the NR step: raw approx (~2^-12 rel err) would miss the
    # verification tolerance on the relative term.
    inv = pl.reciprocal(denom, approx=True)
    inv = inv * (2.0 - denom * inv)

    # 1/N is pre-folded into a_scaled / b_scaled by the wrapper:
    #   combined = diff2 * (alpha/N + ((1-alpha)/N) * inv)
    combined = diff2 * (a_scaled + b_scaled * inv)

    # Single cross-lane reduction; scalar result goes straight to SMEM.
    out_ref[0] = jnp.sum(combined)


def hybrid_mse_relative_loss(pred, target, *, alpha=ALPHA, eps=EPS):
    assert pred.shape == target.shape
    n_elems = pred.size
    assert n_elems % LANE == 0, "flattened size must be a multiple of 128"
    rows = n_elems // LANE
    # Single-shot kernel: whole problem (both inputs) must fit comfortably in
    # VMEM (bounded against v7x's 32 MiB scoped default with margin).
    assert rows * LANE * 4 * 2 <= 8 * 1024 * 1024, (
        "use a tiled variant for large inputs")

    # Lane-dense (rows, 128) slabs; reshape of a contiguous array is free.
    p2 = pred.reshape(rows, LANE)
    t2 = target.reshape(rows, LANE)

    inv_n = 1.0 / float(n_elems)
    kernel = functools.partial(
        _hybrid_loss_kernel,
        a_scaled=float(alpha) * inv_n,
        b_scaled=(1.0 - float(alpha)) * inv_n,
        eps=float(eps),
    )

    out = pl.pallas_call(
        kernel,
        out_shape=jax.ShapeDtypeStruct((1,), jnp.float32),
        # No grid: whole-array blocks, no software pipeline / double buffering.
        in_specs=[
            pl.BlockSpec(memory_space=pltpu.MemorySpace.VMEM),
            pl.BlockSpec(memory_space=pltpu.MemorySpace.VMEM),
        ],
        # Scalar reduction result belongs in SMEM, not a padded VMEM tile.
        out_specs=pl.BlockSpec(memory_space=pltpu.MemorySpace.SMEM),
    )(p2, t2)
    return out[0]


def _reference_loss(pred, target, alpha=ALPHA, eps=EPS):
    mse_part = (pred - target) ** 2
    rel_part = mse_part / jnp.maximum(target ** 2, eps)
    return alpha * jnp.mean(mse_part) + (1.0 - alpha) * jnp.mean(rel_part)


if __name__ == "__main__":
    key = jax.random.PRNGKey(0)
    k1, k2 = jax.random.split(key)
    shape = (2, 4, 16, 16)  # NCHW
    pred = jax.random.normal(k1, shape, dtype=jnp.float32)
    target = jax.random.normal(k2, shape, dtype=jnp.float32)

    loss = hybrid_mse_relative_loss(pred, target)
    jax.block_until_ready(loss)

    ref = _reference_loss(pred, target)
    # Small margin for the different f32 summation order and the NR-refined
    # EUP reciprocal (both ~1-2 ulp effects).
    assert jnp.allclose(loss, ref, rtol=2e-5, atol=1e-6), (loss, ref)
    print("KERNEL_OK")
</pallas_src>

<mosaic_0001>
module attributes {stable_mosaic.version = 11 : i64} {
  func.func @_hybrid_loss_kernel(%arg0: memref<16x128xf32, #tpu.memory_space<vmem>>, %arg1: memref<16x128xf32, #tpu.memory_space<vmem>>, %arg2: memref<1xf32, #tpu.memory_space<smem>>) attributes {dimension_semantics = [], scalar_prefetch = 0 : i64, scratch_operands = 0 : i64, tpu.core_type = #tpu.core_type<tc>} {
    %c0 = arith.constant 0 : index
    %c0_0 = arith.constant 0 : index
    %0 = vector.load %arg0[%c0, %c0_0] : memref<16x128xf32, #tpu.memory_space<vmem>>, vector<16x128xf32>
    %c0_1 = arith.constant 0 : index
    %c0_2 = arith.constant 0 : index
    %1 = vector.load %arg1[%c0_1, %c0_2] : memref<16x128xf32, #tpu.memory_space<vmem>>, vector<16x128xf32>
    %2 = arith.subf %0, %1 : vector<16x128xf32>
    %3 = arith.mulf %2, %2 : vector<16x128xf32>
    %4 = arith.mulf %1, %1 : vector<16x128xf32>
    %cst = arith.constant 9.99999974E-6 : f32
    %5 = vector.broadcast %cst : f32 to vector<16x128xf32>
    %6 = arith.maximumf %4, %5 : vector<16x128xf32>
    %7 = tpu.reciprocal %6 {approx = true} : vector<16x128xf32> -> vector<16x128xf32>
    %8 = arith.mulf %6, %7 : vector<16x128xf32>
    %cst_3 = arith.constant 2.000000e+00 : f32
    %9 = vector.broadcast %cst_3 : f32 to vector<16x128xf32>
    %10 = arith.subf %9, %8 : vector<16x128xf32>
    %11 = arith.mulf %7, %10 : vector<16x128xf32>
    %cst_4 = arith.constant 2.44140625E-4 : f32
    %12 = vector.broadcast %cst_4 : f32 to vector<16x128xf32>
    %13 = arith.mulf %12, %11 : vector<16x128xf32>
    %cst_5 = arith.constant 2.44140625E-4 : f32
    %14 = vector.broadcast %cst_5 : f32 to vector<16x128xf32>
    %15 = arith.addf %14, %13 : vector<16x128xf32>
    %16 = arith.mulf %3, %15 : vector<16x128xf32>
    %17 = vector.shape_cast %16 : vector<16x128xf32> to vector<1x16x128xf32>
    %cst_6 = arith.constant dense<0.000000e+00> : vector<1xf32>
    %18 = vector.multi_reduction <add>, %17, %cst_6 [1, 2] : vector<1x16x128xf32> to vector<1xf32>
    %19 = vector.shape_cast %18 : vector<1xf32> to vector<1x1x1xf32>
    %20 = vector.extract %19[0, 0, 0] : f32 from vector<1x1x1xf32>
    %c0_7 = arith.constant 0 : index
    %21 = memref.load %arg2[%c0_7] : memref<1xf32, #tpu.memory_space<smem>>
    memref.store %20, %arg2[%c0_7] : memref<1xf32, #tpu.memory_space<smem>>
    return
  }
}

</mosaic_0001>

<bundles_post_ra>
// kernel: tpu_custom_call.1
= control target key start
LH: loop header
LB: loop body
LE: loop exit
PB: predicated region body
PF: predicated region fallthrough
CT: control target
= control target key end

     0   :  { %7 = vsyncpa [#allocation3], 0  ;;  %s220_s0 = inlined_call_operand.hbm [shape: f32[16,128], index: 0, kind: input, shape index: {}]   ;;  %s221_s1 = inlined_call_operand.hbm [shape: f32[16,128], index: 1, kind: input, shape index: {}]   ;;  %s222_s2 = inlined_call_operand.hbm [shape: f32[1], index: 2, kind: output, shape index: {}]  }
   0x1   :  { %8 = vsyncpa [#allocation6], 0 }
   0x2   :  { %9 = vsyncpa [#allocation4], 0  ;;  %s164_s9 = smov [#allocation2]   ;;  %s104_s13 = scalar_lea.hbm %s220_s0, 256 }
   0x3   :  { %s15_s10 = sshll.u32 %s164_s9, 4  ;;  %p105_p0 = scmp.ne.s32.totalorder %s220_s0, %s104_s13  ;;  %s16_s10 = int_to_ptr.vmem [resolvable:$true] %s15_s10 }
   0x4   :  { %p108_p1 = scmp.lt.u32.totalorder %s104_s13, %s220_s0 }
   0x6   :  { %p110_p2 = pnand %p108_p1, %p105_p0 }
   0x8   :  { %113 = shalt.err (!%p110_p2)
}
   0x9   :  { %s114_s18 = scalar_lea.vmem %s16_s10, 256  ;;  %p119_p4 = scmp.lt.s32.totalorder %s16_s10, %s16_s10 }
   0xa   :  { %p115_p3 = scmp.ne.s32.totalorder %s16_s10, %s114_s18  ;;  %p120_p5 = scmp.lt.s32.totalorder %s114_s18, %s114_s18 }
   0xc   :  { %p121_p6 = por %p120_p5, %p119_p4 }
   0xe   :  { %p122_p7 = pnand %p121_p6, %p115_p3 }
  0x10   :  { %125 = shalt.err (!%p122_p7)
}
  0x11   :  { %s165_s19 = smov 128   ;;  %s166_s20 = smov 8  }
  0x12   :  { %21 = dma.hbm_to_vmem [thread:$0]  %s220_s0, 256, %s16_s10, [#allocation3], %s165_s19, %s165_s19, %s166_s20  }
  0x13   :  { %s167_s23 = smov [#allocation5]   ;;  %s126_s27 = scalar_lea.hbm %s221_s1, 256 }
  0x14   :  { %s27_s24 = sshll.u32 %s167_s23, 4  ;;  %p127_p8 = scmp.ne.s32.totalorder %s221_s1, %s126_s27  ;;  %s28_s24 = int_to_ptr.vmem [resolvable:$true] %s27_s24 }
  0x15   :  { %p130_p9 = scmp.lt.u32.totalorder %s126_s27, %s221_s1 }
  0x17   :  { %p132_p10 = pnand %p130_p9, %p127_p8 }
  0x19   :  { %135 = shalt.err (!%p132_p10)
}
  0x1a   :  { %s136_s4 = scalar_lea.vmem %s28_s24, 256  ;;  %p141_p12 = scmp.lt.s32.totalorder %s28_s24, %s28_s24 }
  0x1b   :  { %p137_p11 = scmp.ne.s32.totalorder %s28_s24, %s136_s4  ;;  %p142_p13 = scmp.lt.s32.totalorder %s136_s4, %s136_s4 }
  0x1d   :  { %p143_p0 = por %p142_p13, %p141_p12 }
  0x1f   :  { %p144_p1 = pnand %p143_p0, %p137_p11 }
  0x21   :  { %147 = shalt.err (!%p144_p1)
}
  0x22   :  { %33 = dma.hbm_to_vmem [thread:$0]  %s221_s1, 256, %s28_s24, [#allocation6], %s165_s19, %s165_s19, %s166_s20  }
  0x23   :  { %158 = dma.done.wait [#allocation3], 256  }
  0x24   :  { %159 = vsyncadd [#allocation3], 4294967040 }
  0x25   :  { %160 = dma.done.wait [#allocation6], 256  }
  0x26   :  { %161 = vsyncadd [#allocation6], 4294967040  ;;  %v42_v0 = vld [vmem:[#allocation5] sm:$0xff]  ;;  %v43_v1 = vld [vmem:[#allocation5 + $0x8] sm:$0xff]  ;;  %s148_s8 = scalar_lea.hbm %s222_s2, 16 }
  0x27   :  { %v48_v2 = vmul.f32 %v42_v0, %v42_v0  ;;  %v49_v3 = vmul.f32 %v43_v1, %v43_v1  ;;  %v40_v7 = vld [vmem:[#allocation2] sm:$0xff]  ;;  %v41_v9 = vld [vmem:[#allocation2 + $0x8] sm:$0xff]  ;;  %p149_p2 = scmp.ne.s32.totalorder %s222_s2, %s148_s8  ;;  %p152_p3 = scmp.lt.u32.totalorder %s148_s8, %s222_s2 }
  0x28   :  { %v44_v12 = vsub.f32 %v40_v7, %v42_v0  ;;  %v45_v14 = vsub.f32 %v41_v9, %v43_v1 }
  0x29   :  { %v50_v4 = vmax.f32 %v48_v2, 1e-05  ;;  %v51_v5 = vmax.f32 %v49_v3, 1e-05  ;;  %p154_p4 = pnand %p152_p3, %p149_p2 }
  0x2a   :  { %v46_v18 = vmul.f32 %v44_v12, %v44_v12  ;;  %v47_v20 = vmul.f32 %v45_v14, %v45_v14 }
  0x2b   :  { %100 = vrcp.f32 %v50_v4 }
  0x2c   :  { %102 = vrcp.f32 %v51_v5 }
  0x35   :  { %v101_v6 = vpop.eup %100 }
  0x36   :  { %v103_v8 = vpop.eup %102  ;;  %v54_v10 = vmul.f32 %v101_v6, %v50_v4 }
  0x37   :  { %v55_v11 = vmul.f32 %v103_v8, %v51_v5 }
  0x38   :  { %v56_v13 = vsub.f32 2.0, %v54_v10 }
  0x39   :  { %v57_v15 = vsub.f32 2.0, %v55_v11 }
  0x3a   :  { %v58_v16 = vmul.f32 %v101_v6, %v56_v13 }
  0x3b   :  { %v59_v17 = vmul.f32 %v103_v8, %v57_v15 }
  0x3c   :  { %v60_v19 = vmul.f32 0.00024414063, %v58_v16 }
  0x3d   :  { %v61_v21 = vmul.f32 0.00024414063, %v59_v17 }
  0x3e   :  { %v62_v22 = vadd.f32 0.00024414063, %v60_v19 }
  0x3f   :  { %v63_v23 = vadd.f32 0.00024414063, %v61_v21 }
  0x40   :  { %v64_v24 = vmul.f32 %v62_v22, %v46_v18 }
  0x41   :  { %v65_v25 = vmul.f32 %v63_v23, %v47_v20 }
  0x43   :  { %v66_v26 = vadd.f32 %v65_v25, %v64_v24 }
  0x45   :  { %67 = vadd.xlane.f32.xlu0 %v66_v26 }
  0xd2   :  { %v68_v27 = vpop.xlane.xlu0 %67 }
  0xd3   :  { %v69_v28 = vrot.slane %v68_v27, 4 }
  0xd5   :  { %v70_v29 = vadd.f32 %v69_v28, %v68_v27 }
  0xd7   :  { %v71_v30 = vrot.slane %v70_v29, 2 }
  0xd9   :  { %v72_v31 = vadd.f32 %v71_v30, %v70_v29 }
  0xdb   :  { %v73_v32 = vrot.slane %v72_v31, 1 }
  0xdd   :  { %v74_v33 = vadd.f32 %v73_v32, %v72_v31 }
  0xdf   :  { %93 = vpush %v74_v33 }
 0x110   :  { %s94_s1 = spop %93 }
 0x111   :  { %77 = sst [smem:[#allocation7]] %s94_s1 }
 0x112   :  { %157 = shalt.err (!%p154_p4)
}
 0x113   :  { %s168_s13 = smov [#allocation7]  }
 0x114   :  { %85 = dma.smem_to_hbm %s168_s13, 16, %s222_s2, [#allocation4]  }
 0x115   :  { %162 = dma.done.wait [#allocation4], 16  }
 0x116   :  { %163 = vsyncadd [#allocation4], 4294967280 }
 0x117   :  { %89 = sfence }
 0x118   :  { %90 = vsyncpa [#allocation3], 1 }
 0x119   :  { %91 = vsyncpa [#allocation6], 1 }
 0x11a   :  { %92 = vsyncpa [#allocation4], 1 }

</bundles_post_ra>
